<compile_context>
chip_gen: v7x
topology: tpu7x:2x2x1
jax: 0.10.0
libtpu: 0.0.40
codegen_flags: <defaults>
</compile_context>

<pallas_src>
import functools

import jax
import jax.numpy as jnp
from jax import lax
from jax.experimental import pallas as pl
from jax.experimental.pallas import tpu as pltpu

block_size = 8   # max sequence length (causal mask size)
n_embd = 32      # embedding dim C
head_size = 16   # attention head dim H


def _head_kernel(x_ref, w_ref, bias_ref, o_ref, *, head_dim, scale):
    # x_ref:    (B*T, C)    f32   activations, batch folded into rows
    # w_ref:    (C, 3H)     bf16  fused [Wk | Wq | Wv]
    # bias_ref: (B*T, B*T)  f32   0 where attention allowed, -inf elsewhere
    # o_ref:    (B*T, H)    f32
    H = head_dim

    # Single fused QKV projection on the MXU (bf16 operands, f32 accumulate).
    xb = x_ref[...].astype(jnp.bfloat16)
    kqv = jnp.dot(xb, w_ref[...], preferred_element_type=jnp.float32)  # (BT, 3H)
    k = kqv[:, :H]
    q = kqv[:, H:2 * H]
    v = kqv[:, 2 * H:]

    # scores = q @ k^T * C^-0.5 ; contract dim 1 of both (no transpose of k).
    s = lax.dot_general(
        q.astype(jnp.bfloat16), k.astype(jnp.bfloat16),
        dimension_numbers=(((1,), (1,)), ((), ())),
        preferred_element_type=jnp.float32)                            # (BT, BT)
    s = s * scale + bias_ref[...]

    # Numerically stable softmax, all f32 on VPU/EUP.
    s = s - jnp.max(s, axis=-1, keepdims=True)
    p = jnp.exp(s)
    p = p * pl.reciprocal(jnp.sum(p, axis=-1, keepdims=True), approx=True)

    out = jnp.dot(p.astype(jnp.bfloat16), v.astype(jnp.bfloat16),
                  preferred_element_type=jnp.float32)                  # (BT, H)
    o_ref[...] = out.astype(o_ref.dtype)


def fuse_head_weights(w_key, w_query, w_value):
    """PyTorch-layout (H, C) Linear weights -> fused (C, 3H) bf16 operand.

    Call once per model, outside the per-token hot path."""
    w = jnp.concatenate([w_key.T, w_query.T, w_value.T], axis=1)  # (C, 3H)
    return w.astype(jnp.bfloat16)


@jax.jit
def head_forward(x, w_kqv):
    """x: (B, T, C) float32; w_kqv: (C, 3H) fused weight from fuse_head_weights."""
    B, T, C = x.shape
    H = w_kqv.shape[1] // 3
    assert T <= block_size and C == n_embd
    BT = B * T

    # Fold batch into rows; contiguous reshape outside the kernel is free.
    x2d = x.reshape(BT, C)

    # Block-diagonal causal additive mask over the flattened B*T axis:
    # row i may attend to col j iff same batch element and j <= i.
    ids = jnp.arange(BT, dtype=jnp.int32)
    same_batch = (ids[:, None] // T) == (ids[None, :] // T)
    causal = ids[None, :] <= ids[:, None]
    bias = jnp.where(same_batch & causal, 0.0, -jnp.inf).astype(jnp.float32)

    out2d = pl.pallas_call(
        functools.partial(_head_kernel, head_dim=H, scale=float(C) ** -0.5),
        out_shape=jax.ShapeDtypeStruct((BT, H), x.dtype),
        in_specs=[pl.BlockSpec(memory_space=pltpu.MemorySpace.VMEM)] * 3,
        out_specs=pl.BlockSpec(memory_space=pltpu.MemorySpace.VMEM),
    )(x2d, w_kqv, bias)
    return out2d.reshape(B, T, H)


def _reference(x, w_key, w_query, w_value):
    B, T, C = x.shape
    k = x @ w_key.T
    q = x @ w_query.T
    v = x @ w_value.T
    wei = (q @ jnp.swapaxes(k, -2, -1)) * (C ** -0.5)
    mask = jnp.tril(jnp.ones((T, T), dtype=bool))
    wei = jnp.where(mask, wei, -jnp.inf)
    wei = jax.nn.softmax(wei, axis=-1)
    return wei @ v


if __name__ == "__main__":
    key = jax.random.PRNGKey(0)
    kx, kk, kq, kv = jax.random.split(key, 4)

    B, T = 2, block_size
    x = jax.random.normal(kx, (B, T, n_embd), dtype=jnp.float32)
    # deterministic synthetic Linear weights, PyTorch layout (out, in)
    w_key = jax.random.normal(kk, (head_size, n_embd), dtype=jnp.float32) * 0.1
    w_query = jax.random.normal(kq, (head_size, n_embd), dtype=jnp.float32) * 0.1
    w_value = jax.random.normal(kv, (head_size, n_embd), dtype=jnp.float32) * 0.1

    # Weight fusion / transpose happens once, outside the per-call hot path.
    w_kqv = fuse_head_weights(w_key, w_query, w_value)

    out = head_forward(x, w_kqv)
    jax.block_until_ready(out)

    ref = _reference(x, w_key, w_query, w_value)
    assert out.shape == (B, T, head_size)
    # bf16 MXU operands + approx reciprocal => relaxed tolerance vs the f32 ref.
    assert jnp.allclose(out, ref, atol=3e-2, rtol=3e-2), float(
        jnp.max(jnp.abs(out - ref)))

    print("KERNEL_OK")
</pallas_src>

<mosaic_0001>
module attributes {stable_mosaic.version = 11 : i64} {
  func.func @_head_kernel(%arg0: memref<16x32xf32, #tpu.memory_space<vmem>>, %arg1: memref<32x48xbf16, #tpu.memory_space<vmem>>, %arg2: memref<16x16xf32, #tpu.memory_space<vmem>>, %arg3: memref<16x16xf32, #tpu.memory_space<vmem>>) attributes {dimension_semantics = [], scalar_prefetch = 0 : i64, scratch_operands = 0 : i64, tpu.core_type = #tpu.core_type<tc>} {
    %c0 = arith.constant 0 : index
    %c0_0 = arith.constant 0 : index
    %0 = vector.load %arg0[%c0, %c0_0] : memref<16x32xf32, #tpu.memory_space<vmem>>, vector<16x32xf32>
    %1 = arith.truncf %0 : vector<16x32xf32> to vector<16x32xbf16>
    %c0_1 = arith.constant 0 : index
    %c0_2 = arith.constant 0 : index
    %2 = vector.load %arg1[%c0_1, %c0_2] : memref<32x48xbf16, #tpu.memory_space<vmem>>, vector<32x48xbf16>
    %cst = arith.constant dense<0.000000e+00> : vector<16x48xf32>
    %3 = tpu.matmul %1, %2, %cst {dimension_numbers = #tpu.dot_dimension_numbers<[1], [0], [0], [1], [0, 0, 1, 1], [], []>} : vector<16x32xbf16>, vector<32x48xbf16>, vector<16x48xf32> -> vector<16x48xf32>
    %4 = vector.extract_strided_slice %3 {offsets = [0, 0], sizes = [16, 16], strides = [1, 1]} : vector<16x48xf32> to vector<16x16xf32>
    %5 = vector.extract_strided_slice %3 {offsets = [0, 16], sizes = [16, 16], strides = [1, 1]} : vector<16x48xf32> to vector<16x16xf32>
    %6 = vector.extract_strided_slice %3 {offsets = [0, 32], sizes = [16, 16], strides = [1, 1]} : vector<16x48xf32> to vector<16x16xf32>
    %7 = arith.truncf %5 : vector<16x16xf32> to vector<16x16xbf16>
    %8 = arith.truncf %4 : vector<16x16xf32> to vector<16x16xbf16>
    %cst_3 = arith.constant dense<0.000000e+00> : vector<16x16xf32>
    %9 = tpu.matmul %7, %8, %cst_3 {dimension_numbers = #tpu.dot_dimension_numbers<[1], [1], [0], [0], [0, 0, 1, 0], [], []>} : vector<16x16xbf16>, vector<16x16xbf16>, vector<16x16xf32> -> vector<16x16xf32>
    %cst_4 = arith.constant 0.176776692 : f32
    %10 = vector.broadcast %cst_4 : f32 to vector<16x16xf32>
    %11 = arith.mulf %9, %10 : vector<16x16xf32>
    %c0_5 = arith.constant 0 : index
    %c0_6 = arith.constant 0 : index
    %12 = vector.load %arg2[%c0_5, %c0_6] : memref<16x16xf32, #tpu.memory_space<vmem>>, vector<16x16xf32>
    %13 = arith.addf %11, %12 : vector<16x16xf32>
    %cst_7 = arith.constant dense<0xFF800000> : vector<16xf32>
    %14 = vector.multi_reduction <maximumf>, %13, %cst_7 [1] : vector<16x16xf32> to vector<16xf32>
    %15 = vector.shape_cast %14 : vector<16xf32> to vector<16x1xf32>
    %16 = vector.broadcast %15 : vector<16x1xf32> to vector<16x16xf32>
    %17 = arith.subf %13, %16 : vector<16x16xf32>
    %18 = math.exp %17 : vector<16x16xf32>
    %cst_8 = arith.constant dense<0.000000e+00> : vector<16xf32>
    %19 = vector.multi_reduction <add>, %18, %cst_8 [1] : vector<16x16xf32> to vector<16xf32>
    %20 = vector.shape_cast %19 : vector<16xf32> to vector<16x1xf32>
    %21 = tpu.reciprocal %20 {approx = true} : vector<16x1xf32> -> vector<16x1xf32>
    %22 = vector.broadcast %21 : vector<16x1xf32> to vector<16x16xf32>
    %23 = arith.mulf %18, %22 : vector<16x16xf32>
    %24 = arith.truncf %23 : vector<16x16xf32> to vector<16x16xbf16>
    %25 = arith.truncf %6 : vector<16x16xf32> to vector<16x16xbf16>
    %cst_9 = arith.constant dense<0.000000e+00> : vector<16x16xf32>
    %26 = tpu.matmul %24, %25, %cst_9 {dimension_numbers = #tpu.dot_dimension_numbers<[1], [0], [0], [1], [0, 0, 1, 1], [], []>} : vector<16x16xbf16>, vector<16x16xbf16>, vector<16x16xf32> -> vector<16x16xf32>
    %c0_10 = arith.constant 0 : index
    %c0_11 = arith.constant 0 : index
    %27 = vector.load %arg3[%c0_10, %c0_11] : memref<16x16xf32, #tpu.memory_space<vmem>>, vector<16x16xf32>
    tpu.vector_store %arg3[%c0_10, %c0_11], %26 {strides = array<i32>} : memref<16x16xf32, #tpu.memory_space<vmem>>, vector<16x16xf32>,
    return
  }
}

</mosaic_0001>

<bundles_post_ra>
// kernel: head_forward.1
= control target key start
LH: loop header
LB: loop body
LE: loop exit
PB: predicated region body
PF: predicated region fallthrough
CT: control target
= control target key end

     0   :  { %8 = vsyncpa [#allocation3], 0  ;;  %s416_s0 = inlined_call_operand.vmem [shape: f32[16,32], index: 0, kind: input, shape index: {}]   ;;  %s417_s1 = inlined_call_operand.hbm [shape: bf16[32,48], index: 1, kind: input, shape index: {}]   ;;  %s418_s2 = inlined_call_operand.vmem [shape: f32[16,16], index: 2, kind: input, shape index: {}]   ;;  %s419_s3 = inlined_call_operand.hbm [shape: f32[16,16], index: 3, kind: output, shape index: {}]  }
   0x1   :  { %9 = vsyncpa [#allocation4], 0  ;;  %s341_s12 = smov [#allocation2]   ;;  %s293_s16 = scalar_lea.hbm %s417_s1, 256 }
   0x2   :  { %s17_s13 = sshll.u32 %s341_s12, 4  ;;  %p294_p0 = scmp.ne.s32.totalorder %s417_s1, %s293_s16  ;;  %s18_s13 = int_to_ptr.vmem [resolvable:$true] %s17_s13 }
   0x3   :  { %p297_p1 = scmp.lt.u32.totalorder %s293_s16, %s417_s1 }
   0x5   :  { %p299_p2 = pnand %p297_p1, %p294_p0 }
   0x7   :  { %302 = shalt.err (!%p299_p2)
}
   0x8   :  { %s303_s21 = scalar_lea.vmem %s18_s13, 256  ;;  %p308_p4 = scmp.lt.s32.totalorder %s18_s13, %s18_s13 }
   0x9   :  { %p304_p3 = scmp.ne.s32.totalorder %s18_s13, %s303_s21  ;;  %p309_p5 = scmp.lt.s32.totalorder %s303_s21, %s303_s21 }
   0xb   :  { %p310_p6 = por %p309_p5, %p308_p4 }
   0xd   :  { %p311_p7 = pnand %p310_p6, %p304_p3 }
   0xf   :  { %314 = shalt.err (!%p311_p7)
}
  0x10   :  { %s342_s22 = smov 64   ;;  %s343_s23 = smov 4  }
  0x11   :  { %23 = dma.hbm_to_vmem [thread:$0]  %s417_s1, 256, %s18_s13, [#allocation3], %s342_s22, %s342_s22, %s343_s23  }
  0x12   :  { %337 = dma.done.wait [#allocation3], 256  }
  0x13   :  { %338 = vsyncadd [#allocation3], 4294967040  ;;  %v344_v0 = vmov 0.0   ;;  %vm345_vm0 = vmmov 0   ;;  %v283_v1 = vld [vmem:[#allocation2] sm:$0xff]   ;;  %v284_v2 = vld [vmem:[#allocation2 + $0x8] sm:$0xff]  }
  0x14   :  { %253 = vmatprep.subr.bf16.mxu0 %v344_v0  ;;  %257 = vmatprep.mubr.msk.bf16.mxu0 %vm345_vm0, %v344_v0  ;;  %v30_v3 = vld [vmem:[%s416_s0] sm:$0xff]  ;;  %v31_v4 = vld [vmem:[%s416_s0 + $0x8] sm:$0xff]  ;;  %vm49_vm1 = vcmask 261120   ;;  %vm98_vm2 = vcmask 130048   ;;  %s346_s1 = smov 112   ;;  %s348_s6 = smov [#allocation5]  }
  0x15   :  { %261 = vmatprep.subr.bf16.mxu1 %v344_v0  ;;  %263 = vmatprep.mubr.msk.bf16.mxu1 %vm345_vm0, %v344_v0  ;;  %v32_v5 = vpack.c.bf16 %v31_v4, %v30_v3  ;;  %v148_v14 = vld [vmem:[%s418_s2] sm:$0xff]  ;;  %v149_v18 = vld [vmem:[%s418_s2 + $0x8] sm:$0xff]  ;;  %s347_s2 = smov 96   ;;  %s229_s7 = sshll.u32 %s348_s6, 4  ;;  %s230_s7 = int_to_ptr.vmem [resolvable:$true] %s229_s7 }
  0x16   :  { %254 = vmatpush3.bf16.msra.mxu0 %v283_v1  ;;  %s315_s8 = scalar_lea.vmem %s230_s7, 256  ;;  %p320_p9 = scmp.lt.s32.totalorder %s230_s7, %s230_s7 }
  0x17   :  { %255 = vmatprep.subr.bf16.mxu0 %v344_v0  ;;  %p316_p8 = scmp.ne.s32.totalorder %s230_s7, %s315_s8  ;;  %p321_p10 = scmp.lt.s32.totalorder %s315_s8, %s315_s8 }
  0x19   :  { %p322_p11 = por %p321_p10, %p320_p9 }
  0x1a   :  { %256 = vmatpush3.bf16.msra.mxu0 %v284_v2 }
  0x1b   :  { %267 = vmatprep.subr.bf16.mxu0 %v344_v0  ;;  %p323_p12 = pnand %p322_p11, %p316_p8 }
  0x1d   :  { %258 = vmatmul.mubr.msk.bf16.vlgmr.msra.gmra.mrb[0].mxu0 %vm49_vm1, %v32_v5 }
  0x1e   :  { %269 = vmatprep.mubr.msk.bf16.mxu0 %vm345_vm0, %v344_v0 }
  0xf0   :  { %v87_v6 = vpop.f32.mrb[0].mxu0 }
  0xf1   :  { %v259_v7 = vpop.f32.mrb[1].mxu0 }
  0xf2   :  { %v90_v8 = vpop.f32.mrb[2].mxu0 }
  0xf3   :  { %v94_v9 = vpack.c.bf16 %v90_v8, %v87_v6  ;;  %v260_v10 = vpop.f32.mrb[3].mxu0 }
  0xf5   :  { %96 = vrot.lane.b32.xlu0 %v94_v9, %s346_s1  ;;  %v103_v11 = vsel %vm98_vm2, %v94_v9, 0 }
  0xf6   :  { %262 = vmatpush3.bf16.xpose.msra.mxu1 %v103_v11 }
 0x167   :  { %v97_v12 = vpop.permute.xlu0 %96 }
 0x168   :  { %264 = vmatmul.mubr.msk.bf16.vlgmr.msra.gmra.mrb[0].mxu1 %vm98_vm2, %v97_v12 }
 0x23b   :  { %v139_v13 = vpop.f32.mrb[0].mxu1 }
 0x23c   :  { %v146_v15 = vmul.f32 0.17677669, %v139_v13  ;;  %v265_v16 = vpop.f32.mrb[1].mxu1 }
 0x23d   :  { %v142_v17 = vpop.f32.mrb[2].mxu1 }
 0x23e   :  { %v147_v19 = vmul.f32 0.17677669, %v142_v17  ;;  %v266_v20 = vpop.f32.mrb[3].mxu1  ;;  %v150_v21 = vadd.f32 %v148_v14, %v146_v15 }
 0x240   :  { %v152_v22 = vsel %vm98_vm2, %v150_v21, -inf  ;;  %v151_v23 = vadd.f32 %v149_v18, %v147_v19 }
 0x241   :  { %153 = vmax.xlane.f32.xlu0 %v152_v22 }
 0x242   :  { %v155_v24 = vsel %vm98_vm2, %v151_v23, -inf }
 0x243   :  { %156 = vmax.xlane.f32.xlu1 %v155_v24 }
 0x2ce   :  { %v154_v25 = vpop.xlane.xlu0 %153 }
 0x2cf   :  { %v158_v26 = vsub.f32 %v150_v21, %v154_v25 }
 0x2d0   :  { %v157_v27 = vpop.xlane.xlu1 %156 }
 0x2d1   :  { %v160_v28 = vmul.f32 1.442695, %v158_v26  ;;  %v159_v29 = vsub.f32 %v151_v23, %v157_v27 }
 0x2d3   :  { %285 = vpow2.f32 %v160_v28  ;;  %v162_v30 = vmul.f32 1.442695, %v159_v29 }
 0x2d5   :  { %287 = vpow2.f32 %v162_v30 }
 0x2dd   :  { %v286_v31 = vpop.eup %285 }
 0x2de   :  { %v164_v32 = vsel %vm98_vm2, %v286_v31, 0.0 }
 0x2df   :  { %v288_v33 = vpop.eup %287  ;;  %165 = vadd.xlane.f32.xlu1 %v164_v32 }
 0x2e0   :  { %v167_v34 = vsel %vm98_vm2, %v288_v33, 0.0 }
 0x2e3   :  { %168 = vadd.xlane.f32.xlu1 %v167_v34 }
 0x2f4   :  { %175 = vrot.lane.b32.xlu1 %v94_v9, %s347_s2 }
 0x36c   :  { %v166_v35 = vpop.xlane.xlu1 %165 }
 0x36d   :  { %289 = vrcp.f32 %v166_v35 }
 0x370   :  { %v169_v36 = vpop.xlane.xlu1 %168 }
 0x371   :  { %291 = vrcp.f32 %v169_v36 }
 0x374   :  { %v176_v37 = vpop.permute.xlu1 %175 }
 0x375   :  { %268 = vmatpush3.bf16.msra.mxu0 %v176_v37 }
 0x377   :  { %v290_v38 = vpop.eup %289 }
 0x378   :  { %v172_v40 = vmul.f32 %v290_v38, %v286_v31 }
 0x37b   :  { %v292_v39 = vpop.eup %291 }
 0x37c   :  { %v173_v41 = vmul.f32 %v292_v39, %v288_v33 }
 0x37e   :  { %v174_v42 = vpack.c.bf16 %v173_v41, %v172_v40 }
 0x380   :  { %270 = vmatmul.mubr.msk.bf16.vlgmr.msra.gmra.mrb[4].mxu0 %vm98_vm2, %v174_v42 }
 0x453   :  { %v215_v43 = vpop.f32.mrb[4].mxu0 }
 0x454   :  { %222 = vst.msk [vmem:[#allocation5] sm:$0xff] %vm98_vm2, %v215_v43  ;;  %v271_v44 = vpop.f32.mrb[5].mxu0 }
 0x455   :  { %v218_v45 = vpop.f32.mrb[6].mxu0 }
 0x456   :  { %223 = vst.msk [vmem:[#allocation5 + $0x8] sm:$0xff] %vm98_vm2, %v218_v45  ;;  %v272_v46 = vpop.f32.mrb[7].mxu0 }
 0x457   :  { %326 = shalt.err (!%p323_p12)
}
 0x458   :  { %s327_s11 = scalar_lea.hbm %s419_s3, 256 }
 0x459   :  { %p328_p13 = scmp.ne.s32.totalorder %s419_s3, %s327_s11  ;;  %p331_p0 = scmp.lt.u32.totalorder %s327_s11, %s419_s3 }
 0x45b   :  { %p333_p1 = pnand %p331_p0, %p328_p13 }
 0x45d   :  { %336 = shalt.err (!%p333_p1)
}
 0x45e   :  { %s349_s16 = smov 128   ;;  %s350_s17 = smov 8  }
 0x45f   :  { %235 = dma.vmem_to_hbm [thread:$0]  %s230_s7, 256, %s419_s3, [#allocation4], %s349_s16, %s349_s16, %s350_s17  }
 0x460   :  { %339 = dma.done.wait [#allocation4], 256  }
 0x461   :  { %340 = vsyncadd [#allocation4], 4294967040 }
 0x462   :  { %239 = vsyncpa [#allocation3], 1 }
 0x463   :  { %240 = vsyncpa [#allocation4], 1 }

</bundles_post_ra>
